<compile_context>
chip_gen: v7x
topology: tpu7x:2x2x1
jax: 0.10.0
libtpu: 0.0.40
codegen_flags: <defaults>
</compile_context>

<pallas_src>
import jax
import jax.numpy as jnp
from jax.experimental import pallas as pl
from jax.experimental.pallas import tpu as pltpu

N_OBS = 29
N_H1 = 20
N_H2 = 15
N_ACT = 8
N_HEAD = 2 * N_ACT  # fused mean || stddev head

_HIGHEST = jax.lax.Precision.HIGHEST


def _round_up(x, m):
    return (x + m - 1) // m * m


def _padded_tile_bytes(rows, cols, itemsize=4):
    """Bytes a (rows, cols) f32 tile actually occupies in VMEM ((8,128) tiling)."""
    return _round_up(max(rows, 1), 8) * _round_up(max(cols, 1), 128) * itemsize


def _choose_tile(batch, block_b):
    """Lane-axis batch tile: multiple of 128, capped at block_b, >=2 grid steps
    whenever the batch spans more than one 128-lane block (feeds both v7x TCs)."""
    bp128 = _round_up(batch, 128)
    tb = min(_round_up(max(block_b, 128), 128), bp128)
    if bp128 > 128 and _round_up(batch, tb) // tb < 2:
        tb = max(128, _round_up(pl.cdiv(bp128, 2), 128))
    return tb


def _policy_kernel(xT_ref, w1t_ref, b1t_ref, w2t_ref, b2t_ref, wht_ref, bht_ref,
                   outT_ref):
    xT = xT_ref[...]  # (29, TB) f32, batch on the lane axis

    # shared_net: Linear -> Tanh -> Linear -> Tanh   (all in (feat, TB) layout)
    h1 = jnp.tanh(
        jnp.dot(w1t_ref[...], xT, precision=_HIGHEST,
                preferred_element_type=jnp.float32) + b1t_ref[...]
    )  # (20, TB)
    h2 = jnp.tanh(
        jnp.dot(w2t_ref[...], h1, precision=_HIGHEST,
                preferred_element_type=jnp.float32) + b2t_ref[...]
    )  # (15, TB)

    # Fused mean||stddev head: one (16,15) @ (15,TB) matmul.
    s = jnp.dot(wht_ref[...], h2, precision=_HIGHEST,
                preferred_element_type=jnp.float32) + bht_ref[...]  # (16, TB)

    # Numerically stable softplus on the whole tile, then per-row select:
    # rows [0,8) keep the linear value (mean), rows [8,16) take softplus.
    softplus = jnp.maximum(s, 0.0) + jnp.log1p(jnp.exp(-jnp.abs(s)))
    row = jax.lax.broadcasted_iota(jnp.int32, s.shape, dimension=0)
    outT_ref[...] = jnp.where(row < N_ACT, s, softplus)  # lane-dense (16, TB) store


def action_policy_forward(x, params, *, block_b=4096, min_pallas_batch=256):
    """x: (B, 29). Returns (action_means (B, 8), action_stddevs (B, 8)), f32."""
    w1, b1, w2, b2, wm, bm, ws, bs = params
    x = x.astype(jnp.float32)  # mirrors x.float() in the reference
    B = x.shape[0]

    # Small-batch fallback: the fused XLA dot chain beats pallas_call overhead
    # at RL action-selection batch sizes (and keeps the v7x idle-TC issue moot).
    if B < min_pallas_batch:
        return reference_forward(x, params)

    # Transposed ("batch-in-lanes") operands: weights (out,in), biases (out,1).
    w1t, b1t = w1.T, b1.reshape(N_H1, 1)
    w2t, b2t = w2.T, b2.reshape(N_H2, 1)
    wht = jnp.concatenate([wm, ws], axis=1).T                  # (16, 15)
    bht = jnp.concatenate([bm, bs], axis=1).reshape(N_HEAD, 1)  # (16, 1)

    tb = _choose_tile(B, block_b)
    bp = _round_up(B, tb)
    xT = x.T  # (29, B): one-time host transpose -> lane-dense kernel input
    if bp != B:
        xT = jnp.pad(xT, ((0, 0), (0, bp - B)))

    # --- VMEM budget (lane/sublane-padded, explicit buffer counts) ---
    weight_vmem = (_padded_tile_bytes(N_H1, N_OBS) + _padded_tile_bytes(N_H1, 1)
                   + _padded_tile_bytes(N_H2, N_H1) + _padded_tile_bytes(N_H2, 1)
                   + _padded_tile_bytes(N_HEAD, N_H2) + _padded_tile_bytes(N_HEAD, 1))
    io_vmem = _padded_tile_bytes(N_OBS, tb) + _padded_tile_bytes(N_HEAD, tb)
    interm_vmem = (_padded_tile_bytes(N_H1, tb) + _padded_tile_bytes(N_H2, tb)
                   + 3 * _padded_tile_bytes(N_HEAD, tb))
    vmem_limit = 2 * io_vmem + 2 * weight_vmem + 2 * interm_vmem + (2 << 20)

    dense_weight_bytes = 4 * (N_OBS * N_H1 + N_H1 + N_H1 * N_H2 + N_H2
                              + N_H2 * N_HEAD + N_HEAD)
    cost = pl.CostEstimate(
        flops=2 * bp * (N_OBS * N_H1 + N_H1 * N_H2 + N_H2 * N_HEAD),
        transcendentals=bp * (N_H1 + N_H2 + 2 * N_HEAD),
        bytes_accessed=4 * bp * (N_OBS + N_HEAD) + dense_weight_bytes,
    )

    outT = pl.pallas_call(
        _policy_kernel,
        out_shape=jax.ShapeDtypeStruct((N_HEAD, bp), jnp.float32),
        grid=(bp // tb,),
        in_specs=[
            pl.BlockSpec((N_OBS, tb), lambda i: (0, i)),     # x^T tile (lane-dense)
            pl.BlockSpec((N_H1, N_OBS), lambda i: (0, 0)),   # w1^T (resident)
            pl.BlockSpec((N_H1, 1), lambda i: (0, 0)),       # b1
            pl.BlockSpec((N_H2, N_H1), lambda i: (0, 0)),    # w2^T
            pl.BlockSpec((N_H2, 1), lambda i: (0, 0)),       # b2
            pl.BlockSpec((N_HEAD, N_H2), lambda i: (0, 0)),  # fused head w^T
            pl.BlockSpec((N_HEAD, 1), lambda i: (0, 0)),     # fused head b
        ],
        out_specs=pl.BlockSpec((N_HEAD, tb), lambda i: (0, i)),
        compiler_params=pltpu.CompilerParams(
            dimension_semantics=("parallel",),
            vmem_limit_bytes=vmem_limit,
        ),
        cost_estimate=cost,
    )(xT, w1t, b1t, w2t, b2t, wht, bht)

    # Slices/transposes only to honor the PyTorch (B,8)/(B,8) return signature;
    # downstream code that can consume the fused (16, B) slab should use outT.
    means = outT[:N_ACT, :B].T
    stddevs = outT[N_ACT:, :B].T
    return means, stddevs


def init_params(key):
    """Deterministic init mimicking torch.nn.Linear (uniform +/- 1/sqrt(fan_in)).

    Weights are stored (in, out); biases are (1, out).
    """
    dims = [(N_OBS, N_H1), (N_H1, N_H2), (N_H2, N_ACT), (N_H2, N_ACT)]
    params = []
    for (fan_in, fan_out) in dims:
        key, kw, kb = jax.random.split(key, 3)
        bound = 1.0 / jnp.sqrt(jnp.float32(fan_in))
        w = jax.random.uniform(kw, (fan_in, fan_out), jnp.float32, -bound, bound)
        b = jax.random.uniform(kb, (1, fan_out), jnp.float32, -bound, bound)
        params.extend([w, b])
    return tuple(params)


def reference_forward(x, params):
    """Plain-JAX reference (also the small-batch fallback path)."""
    w1, b1, w2, b2, wm, bm, ws, bs = params
    x = x.astype(jnp.float32)
    h = jnp.tanh(jnp.dot(x, w1, precision=_HIGHEST) + b1)
    h = jnp.tanh(jnp.dot(h, w2, precision=_HIGHEST) + b2)
    mean = jnp.dot(h, wm, precision=_HIGHEST) + bm
    std = jax.nn.softplus(jnp.dot(h, ws, precision=_HIGHEST) + bs)
    return mean, std


if __name__ == "__main__":
    key = jax.random.PRNGKey(0)
    kp, kx_small, kx_big = jax.random.split(key, 3)
    params = init_params(kp)

    # RL action-selection sized batch -> exercises the small-batch XLA fallback.
    B_small = 4
    x_small = jax.random.normal(kx_small, (B_small, N_OBS), dtype=jnp.float32)
    m_s, s_s = action_policy_forward(x_small, params)
    jax.block_until_ready((m_s, s_s))
    rm_s, rs_s = reference_forward(x_small, params)
    assert m_s.shape == (B_small, N_ACT) and s_s.shape == (B_small, N_ACT)
    assert jnp.allclose(m_s, rm_s, atol=2e-5, rtol=2e-5)
    assert jnp.allclose(s_s, rs_s, atol=2e-5, rtol=2e-5)

    # Learning-sized batch -> exercises the tiled Pallas path
    # (batch padding, >=2 "parallel" grid steps, lane-dense transposed layout).
    B_big = 640
    x_big = jax.random.normal(kx_big, (B_big, N_OBS), dtype=jnp.float32)
    m_b, s_b = action_policy_forward(x_big, params, block_b=256)
    jax.block_until_ready((m_b, s_b))
    rm_b, rs_b = reference_forward(x_big, params)
    assert m_b.shape == (B_big, N_ACT) and s_b.shape == (B_big, N_ACT)
    assert jnp.allclose(m_b, rm_b, atol=2e-5, rtol=2e-5)
    assert jnp.allclose(s_b, rs_b, atol=2e-5, rtol=2e-5)
    assert bool(jnp.all(s_b > 0.0))

    print("KERNEL_OK")
</pallas_src>

<mosaic_0001>
module attributes {stable_mosaic.version = 11 : i64} {
  func.func @_policy_kernel(%arg0: i32, %arg1: memref<29x256xf32, #tpu.memory_space<vmem>>, %arg2: memref<20x29xf32, #tpu.memory_space<vmem>>, %arg3: memref<20x1xf32, #tpu.memory_space<vmem>>, %arg4: memref<15x20xf32, #tpu.memory_space<vmem>>, %arg5: memref<15x1xf32, #tpu.memory_space<vmem>>, %arg6: memref<16x15xf32, #tpu.memory_space<vmem>>, %arg7: memref<16x1xf32, #tpu.memory_space<vmem>>, %arg8: memref<16x256xf32, #tpu.memory_space<vmem>>) attributes {dimension_semantics = [#tpu.dimension_semantics<parallel>], iteration_bounds = array<i64: 3>, scalar_prefetch = 0 : i64, scratch_operands = 0 : i64, tpu.core_type = #tpu.core_type<tc>, window_params = [{transform_indices = @transform_0, window_bounds = array<i64: 29, 256>}, {pipeline_mode = #tpu.pipeline_mode<synchronous>, transform_indices = @transform_1, window_bounds = array<i64: 20, 29>}, {pipeline_mode = #tpu.pipeline_mode<synchronous>, transform_indices = @transform_2, window_bounds = array<i64: 20, 1>}, {pipeline_mode = #tpu.pipeline_mode<synchronous>, transform_indices = @transform_3, window_bounds = array<i64: 15, 20>}, {pipeline_mode = #tpu.pipeline_mode<synchronous>, transform_indices = @transform_4, window_bounds = array<i64: 15, 1>}, {pipeline_mode = #tpu.pipeline_mode<synchronous>, transform_indices = @transform_5, window_bounds = array<i64: 16, 15>}, {pipeline_mode = #tpu.pipeline_mode<synchronous>, transform_indices = @transform_6, window_bounds = array<i64: 16, 1>}, {transform_indices = @transform_7, window_bounds = array<i64: 16, 256>}]} {
    %c0 = arith.constant 0 : index
    %c0_0 = arith.constant 0 : index
    %0 = vector.load %arg1[%c0, %c0_0] : memref<29x256xf32, #tpu.memory_space<vmem>>, vector<29x256xf32>
    %c0_1 = arith.constant 0 : index
    %c0_2 = arith.constant 0 : index
    %1 = vector.load %arg2[%c0_1, %c0_2] : memref<20x29xf32, #tpu.memory_space<vmem>>, vector<20x29xf32>
    %cst = arith.constant dense<0.000000e+00> : vector<20x256xf32>
    %2 = tpu.matmul %1, %0, %cst {dimension_numbers = #tpu.dot_dimension_numbers<[1], [0], [0], [1], [0, 0, 1, 1], [], []>, precision = #tpu.contract_precision<fp32>} : vector<20x29xf32>, vector<29x256xf32>, vector<20x256xf32> -> vector<20x256xf32>
    %c0_3 = arith.constant 0 : index
    %c0_4 = arith.constant 0 : index
    %3 = vector.load %arg3[%c0_3, %c0_4] : memref<20x1xf32, #tpu.memory_space<vmem>>, vector<20x1xf32>
    %4 = vector.broadcast %3 : vector<20x1xf32> to vector<20x256xf32>
    %5 = arith.addf %2, %4 : vector<20x256xf32>
    %6 = math.tanh %5 : vector<20x256xf32>
    %c0_5 = arith.constant 0 : index
    %c0_6 = arith.constant 0 : index
    %7 = vector.load %arg4[%c0_5, %c0_6] : memref<15x20xf32, #tpu.memory_space<vmem>>, vector<15x20xf32>
    %cst_7 = arith.constant dense<0.000000e+00> : vector<15x256xf32>
    %8 = tpu.matmul %7, %6, %cst_7 {dimension_numbers = #tpu.dot_dimension_numbers<[1], [0], [0], [1], [0, 0, 1, 1], [], []>, precision = #tpu.contract_precision<fp32>} : vector<15x20xf32>, vector<20x256xf32>, vector<15x256xf32> -> vector<15x256xf32>
    %c0_8 = arith.constant 0 : index
    %c0_9 = arith.constant 0 : index
    %9 = vector.load %arg5[%c0_8, %c0_9] : memref<15x1xf32, #tpu.memory_space<vmem>>, vector<15x1xf32>
    %10 = vector.broadcast %9 : vector<15x1xf32> to vector<15x256xf32>
    %11 = arith.addf %8, %10 : vector<15x256xf32>
    %12 = math.tanh %11 : vector<15x256xf32>
    %c0_10 = arith.constant 0 : index
    %c0_11 = arith.constant 0 : index
    %13 = vector.load %arg6[%c0_10, %c0_11] : memref<16x15xf32, #tpu.memory_space<vmem>>, vector<16x15xf32>
    %cst_12 = arith.constant dense<0.000000e+00> : vector<16x256xf32>
    %14 = tpu.matmul %13, %12, %cst_12 {dimension_numbers = #tpu.dot_dimension_numbers<[1], [0], [0], [1], [0, 0, 1, 1], [], []>, precision = #tpu.contract_precision<fp32>} : vector<16x15xf32>, vector<15x256xf32>, vector<16x256xf32> -> vector<16x256xf32>
    %c0_13 = arith.constant 0 : index
    %c0_14 = arith.constant 0 : index
    %15 = vector.load %arg7[%c0_13, %c0_14] : memref<16x1xf32, #tpu.memory_space<vmem>>, vector<16x1xf32>
    %16 = vector.broadcast %15 : vector<16x1xf32> to vector<16x256xf32>
    %17 = arith.addf %14, %16 : vector<16x256xf32>
    %cst_15 = arith.constant 0.000000e+00 : f32
    %18 = vector.broadcast %cst_15 : f32 to vector<16x256xf32>
    %19 = arith.maximumf %17, %18 : vector<16x256xf32>
    %20 = math.absf %17 : vector<16x256xf32>
    %cst_16 = arith.constant 0.000000e+00 : f32
    %21 = vector.broadcast %cst_16 : f32 to vector<16x256xf32>
    %22 = arith.subf %21, %20 : vector<16x256xf32>
    %23 = math.exp %22 : vector<16x256xf32>
    %24 = math.log1p %23 : vector<16x256xf32>
    %25 = arith.addf %19, %24 : vector<16x256xf32>
    %26 = tpu.iota {dimensions = array<i32: 0>} : vector<16x256xi32>
    %c8_i32 = arith.constant 8 : i32
    %27 = vector.broadcast %c8_i32 : i32 to vector<16x256xi32>
    %28 = arith.cmpi slt, %26, %27 : vector<16x256xi32>
    %29 = arith.select %28, %17, %25 : vector<16x256xi1>, vector<16x256xf32>
    %c0_17 = arith.constant 0 : index
    %c0_18 = arith.constant 0 : index
    %30 = vector.load %arg8[%c0_17, %c0_18] : memref<16x256xf32, #tpu.memory_space<vmem>>, vector<16x256xf32>
    tpu.vector_store %arg8[%c0_17, %c0_18], %29 {strides = array<i32>} : memref<16x256xf32, #tpu.memory_space<vmem>>, vector<16x256xf32>,
    return
  }
  func.func @transform_0(%arg0: i32) -> (i32, i32) {
    %c0_i32 = arith.constant 0 : i32
    %c0_i32_0 = arith.constant 0 : i32
    return %c0_i32, %arg0 : i32, i32
  }
  func.func @transform_1(%arg0: i32) -> (i32, i32) {
    %c0_i32 = arith.constant 0 : i32
    %c0_i32_0 = arith.constant 0 : i32
    %c0_i32_1 = arith.constant 0 : i32
    return %c0_i32, %c0_i32_0 : i32, i32
  }
  func.func @transform_2(%arg0: i32) -> (i32, i32) {
    %c0_i32 = arith.constant 0 : i32
    %c0_i32_0 = arith.constant 0 : i32
    %c0_i32_1 = arith.constant 0 : i32
    return %c0_i32, %c0_i32_0 : i32, i32
  }
  func.func @transform_3(%arg0: i32) -> (i32, i32) {
    %c0_i32 = arith.constant 0 : i32
    %c0_i32_0 = arith.constant 0 : i32
    %c0_i32_1 = arith.constant 0 : i32
    return %c0_i32, %c0_i32_0 : i32, i32
  }
  func.func @transform_4(%arg0: i32) -> (i32, i32) {
    %c0_i32 = arith.constant 0 : i32
    %c0_i32_0 = arith.constant 0 : i32
    %c0_i32_1 = arith.constant 0 : i32
    return %c0_i32, %c0_i32_0 : i32, i32
  }
  func.func @transform_5(%arg0: i32) -> (i32, i32) {
    %c0_i32 = arith.constant 0 : i32
    %c0_i32_0 = arith.constant 0 : i32
    %c0_i32_1 = arith.constant 0 : i32
    return %c0_i32, %c0_i32_0 : i32, i32
  }
  func.func @transform_6(%arg0: i32) -> (i32, i32) {
    %c0_i32 = arith.constant 0 : i32
    %c0_i32_0 = arith.constant 0 : i32
    %c0_i32_1 = arith.constant 0 : i32
    return %c0_i32, %c0_i32_0 : i32, i32
  }
  func.func @transform_7(%arg0: i32) -> (i32, i32) {
    %c0_i32 = arith.constant 0 : i32
    %c0_i32_0 = arith.constant 0 : i32
    return %c0_i32, %arg0 : i32, i32
  }
}

</mosaic_0001>

<bundles_post_ra>
// kernel: tpu_custom_call.1
= control target key start
LH: loop header
LB: loop body
LE: loop exit
PB: predicated region body
PF: predicated region fallthrough
CT: control target
= control target key end

     0   :  { %12 = vsyncpa [#allocation3], 0  ;;  %s3214_s0 = inlined_call_operand.hbm [shape: f32[29,768], index: 0, kind: input, shape index: {}]   ;;  %s3215_s1 = inlined_call_operand.vmem [shape: f32[20,29], index: 1, kind: input, shape index: {}]   ;;  %s3216_s2 = inlined_call_operand.vmem [shape: f32[20,1], index: 2, kind: input, shape index: {}]   ;;  %s3217_s3 = inlined_call_operand.vmem [shape: f32[15,20], index: 3, kind: input, shape index: {}]   ;;  %s3218_s4 = inlined_call_operand.vmem [shape: f32[15,1], index: 4, kind: input, shape index: {}]   ;;  %s3219_s5 = inlined_call_operand.vmem [shape: f32[16,15], index: 5, kind: input, shape index: {}]   ;;  %s3220_s6 = inlined_call_operand.vmem [shape: f32[16,1], index: 6, kind: input, shape index: {}]   ;;  %s3221_s7 = inlined_call_operand.hbm [shape: f32[16,768], index: 7, kind: output, shape index: {}]  }
   0x1   :  { %14 = vsyncpa [#allocation3 + $0x1], 0 }
   0x2   :  { %15 = vsyncpa [#allocation4], 0 }
   0x3   :  { %17 = vsyncpa [#allocation4 + $0x1], 0  ;;  %s2750_s24 = smov 0   ;;  %s2752_s25 = smov 0  }
   0x4   :  { %s2754_s26 = smov 0   ;;  %s2756_s27 = smov 0  }
   0x5 LB: > { %s2771_s28 = sadd.s32 4294967295, %s2698_s27   ;;  %s2318_s29 = sadd.s32 4294967294, %s2698_s27   ;;  %s2698_s27 = sphi %s2756_s27, %s3234_s27   ;;  %s2694_s26 = sphi %s2754_s26, %s3233_s26   ;;  %s2690_s25 = sphi %s2752_s25, %s3232_s25   ;;  %s2686_s24 = sphi %s2750_s24, %s3231_s24  }
   0x6   : > { %s2775_s30 = sadd.s32 1, %s2698_s27   ;;  %s30_s8 = sadd.s32 1, %s2694_s26 }
   0x7   : > { %s27_s9 = ssub.s32 %s2698_s27, %s2775_s30  ;;  %p37_p0 = scmp.ne.s32.totalorder %s2694_s26, %s2690_s25 }
   0x8   : > { %p28_p1 = scmp.eq.s32.totalorder %s27_s9, 0  ;;  %p38_p2 = scmp.eq.s32.totalorder %s2698_s27, 0 }
   0x9   : > { %p43_p3 = scmp.ne.s32.totalorder %s2690_s25, %s2686_s24  ;;  %p44_p4 = scmp.eq.s32.totalorder %s2771_s28, 0 }
   0xa   : > { %s2787_s10 = scalar_select %p28_p1, %s2694_s26, %s30_s8  }
   0xb   : > { %p2789_p5 = por %p38_p2, %p37_p0  ;;  %p2793_p6 = por %p44_p4, %p43_p3 }
   0xc   : > { %p193_p7 = scmp.eq.s32.totalorder %s2771_s28, 2  ;;  %p199_p8 = scmp.eq.s32.totalorder %s2318_s29, 2 }
   0xd   : > { %p2530_p9 = scmp.lt.s32.totalorder %s2698_s27, 3  ;;  %s237_s15 = sand.u32 1, %s2694_s26  }
   0xe   : > { %p2799_p10 = por %p193_p7, %p37_p0  ;;  %p2803_p11 = por %p199_p8, %p43_p3 }
   0xf   : > { %s2332_s16 = sshll.u32 %s2698_s27, 8  ;;  %s2321_s17 = sshll.u32 %s237_s15, 6 }
  0x10   : > { %s3225_s13 = scalar_select %p2799_p10, 1, 0 }
  0x11   : > { %s3226_s14 = scalar_select %p2803_p11, 1, 0 }
  0x12   : > { %s2812_s20 = scalar_lea.hbm %s3214_s0, %s2332_s16  ;;  %s241_s21 = scalar_lea.vmem [#allocation2], %s2321_s17 }
  0x13   : > { %s248_s22 = sshll.u32 %s241_s21, 4  ;;  %p2816_p12 = pnand %p2530_p9, %p2789_p5  ;;  %s2820_s22 = int_to_ptr.vmem [resolvable:$true] %s248_s22 }
  0x14   : > { %s2823_s29 = scalar_lea.sflag [#allocation3], %s237_s15  ;;  %s2602_s8 = scalar_lea.hbm %s2812_s20, 1024 }
  0x15   : > { %p2603_p0 = scmp.ne.s32.totalorder %s2812_s20, %s2602_s8  ;;  %p2604_p1 = pneg %p2816_p12 }
  0x16   : > { %s2607_s16 = scalar_lea.hbm %s3214_s0, 3072  ;;  %p2608_p4 = scmp.lt.u32.totalorder %s2812_s20, %s3214_s0 }
  0x17   : > { %p2605_p2 = pnand %p2604_p1, %p2603_p0  ;;  %p2609_p5 = scmp.lt.u32.totalorder %s2607_s16, %s2602_s8 }
  0x18   : > { %p2611_p8 = scmp.lt.u32.totalorder %s2602_s8, %s2812_s20 }
  0x19   : > { %p2606_p3 = pneg %p2605_p2  ;;  %p2610_p7 = por %p2609_p5, %p2608_p4 }
  0x1b   : > { %p2612_p9 = por %p2611_p8, %p2610_p7 }
  0x1d   : > { %p2613_p13 = pnand %p2612_p9, %p2606_p3 }
  0x1f   : > { %2616 = shalt.err (!%p2613_p13)
}
  0x20   : > { %s2617_s15 = scalar_lea.vmem %s2820_s22, 1024  ;;  %s2700_s19 = smov [#allocation2]  }
  0x21   : > { %p2618_p0 = scmp.ne.s32.totalorder %s2820_s22, %s2617_s15  ;;  %s2622_s21 = sshll.u32 %s2700_s19, 4  ;;  %s2623_s21 = int_to_ptr.vmem [resolvable:$false] %s2622_s21 }
  0x22   : > { %s2624_s9 = scalar_lea.vmem %s2623_s21, 2048  ;;  %p2625_p10 = scmp.lt.s32.totalorder %s2820_s22, %s2623_s21 }
  0x23   : > { %p2620_p2 = pnand %p2618_p0, %p2604_p1  ;;  %p2626_p4 = scmp.lt.s32.totalorder %s2624_s9, %s2617_s15 }
  0x25   : > { %p2621_p11 = pneg %p2620_p2  ;;  %p2627_p5 = por %p2626_p4, %p2625_p10 }
  0x27   : > { %p2628_p7 = pnand %p2627_p5, %p2621_p11 }
  0x29   : > { %2631 = shalt.err (!%p2628_p7)
}
  0x2a   : > { %s2701_s8 = smov 768   ;;  %s2702_s11 = smov 256  }
  0x2b   : > { %s2703_s16 = smov 16   ;;  %p256_p13 = scmp.lt.s32.totalorder %s2698_s27, 4 }
  0x2c   : > { %2525 = dma.hbm_to_vmem [thread:$0]  (!%p2816_p12), %s2812_s20, 1024, %s2820_s22, %s2823_s29, %s2701_s8, %s2702_s11, %s2703_s16  }
  0x2d   : > { %p3228_p1 = scmp.ge.s32.totalorder %s2698_s27, 1 }
  0x2f   : > { %p257_p3 = pnand %p3228_p1, %p256_p13 }
  0x30   : > { %s2855_s17 = sand.u32 (!%p257_p3), 1, %s2690_s25  }
  0x31   : > { %260 = sbr.rel (%p257_p3) target bundleno = 962 (0x3c2), region = 48  ;;  %s2325_s18 = sshll.u32 (!%p257_p3), %s2855_s17, 6 }
  0x32   : > { %s263_s15 = scalar_lea.sflag (!%p257_p3), [#allocation3], %s2855_s17  ;;  %s266_s19 = scalar_lea.vmem (!%p257_p3), [#allocation2], %s2325_s18 }
  0x38   : > { %2677 = dma.done.wait (%p2793_p6), %s263_s15, 1024  }
  0x39   : > { %2679 = vsyncadd (%p2793_p6), %s263_s15, 4294966272  ;;  %v2704_v0 = vmov 0.0   ;;  %v2705_v1 = vmov 0   ;;  %v300_v2 = vld [vmem:[%s266_s19 + $0x8] sm:$0xff]  ;;  %v302_v3 = vld [vmem:[%s266_s19 + $0x18] sm:$0xff]  ;;  %vm338_vm0 = vcmask 1044480  }
  0x3a   : > { %417 = vmatprep.mubr.f32.mxu0 %v2704_v0  ;;  %2572 = vset.pattern.permute.xlu0 %v2705_v1  ;;  %v299_v4 = vld [vmem:[%s266_s19] sm:$0xff]  ;;  %vm328_vm1 = vcmask 236544   ;;  %v345_v5 = vand.u32 4294901760, %v300_v2  ;;  %v349_v6 = vand.u32 4294901760, %v302_v3  ;;  %v301_v7 = vld [vmem:[%s266_s19 + $0x10] sm:$0xff]  ;;  %v304_v9 = vld [vmem:[%s266_s19 + $0x28] sm:$0xff] }
  0x3b   : > { %2573 = vset.pattern.permute.xlu1 %v2705_v1  ;;  %1207 = vmatprep.mubr.f32.mxu1 %v2704_v0  ;;  %v347_v8 = vand.u32 4294901760, %v299_v4  ;;  %v303_v10 = vld [vmem:[%s266_s19 + $0x20] sm:$0xff]  ;;  %v351_v11 = vand.u32 4294901760, %v301_v7  ;;  %v306_v12 = vld [vmem:[%s266_s19 + $0x38] sm:$0x1f]  ;;  %v353_v13 = vand.u32 4294901760, %v304_v9 }
  0x3c   : > { %v305_v14 = vld [vmem:[%s266_s19 + $0x30] sm:$0x1f]  ;;  %v2865_v15 = vpack.c.bf16 %v349_v6, %v345_v5  ;;  %v2867_v16 = vsub.f32 %v300_v2, %v345_v5  ;;  %v2869_v17 = vsub.f32 %v302_v3, %v349_v6  ;;  %v307_v19 = vld [vmem:[%s3215_s1] sm:$0xff]  ;;  %v308_v20 = vld [vmem:[%s3215_s1 + $0x8] sm:$0xff]  ;;  %v343_v23 = vsel %vm338_vm0, %v306_v12, 0  ;;  %s2326_s22 = sshll.u32 %s2855_s17, 5 }
  0x3d   : > { %v2871_v18 = vsub.f32 %v299_v4, %v347_v8  ;;  %v2879_v21 = vpack.c.bf16 %v351_v11, %v347_v8  ;;  %v2881_v22 = vsub.f32 %v301_v7, %v351_v11  ;;  %v2884_v24 = vsub.f32 %v304_v9, %v353_v13  ;;  %v310_v25 = vld [vmem:[%s3216_s2] sm:$0xff]  ;;  %v311_v30 = vld [vmem:[%s3216_s2 + $0x8] sm:$0xff]  ;;  %v312_v35 = vld [vmem:[%s3216_s2 + $0x10] sm:$0xf]  ;;  %s3158_s23 = scalar_lea.vmem [#allocation5], %s2326_s22  ;;  %s2333_s21 = sshll.u32 %s2771_s28, 8 }
  0x3e   : > { %2335 = vmatprep.subr.bf16.mxu0 %v2865_v15  ;;  %v357_v26 = vand.u32 4294901760, %v343_v23  ;;  %v340_v27 = vsel %vm338_vm0, %v305_v14, 0  ;;  %v355_v28 = vand.u32 4294901760, %v303_v10  ;;  %v330_v29 = vsel %vm328_vm1, %v307_v19, 0  ;;  %315 = vperm.xlu0 %2572, %v310_v25   ;;  %v309_v40 = vld [vmem:[%s3215_s1 + $0x10] sm:$0xf]  ;;  %s3169_s11 = scalar_lea.hbm %s3221_s7, %s2333_s21 }
  0x3f   : > { %2337 = vmatpush1.bf16.msra.mxu0 %v2879_v21  ;;  %v359_v31 = vand.u32 4294901760, %v340_v27  ;;  %v2896_v32 = vand.u32 4294901760, %v330_v29  ;;  %v333_v33 = vsel %vm328_vm1, %v308_v20, 0  ;;  %v453_v34 = vand.u32 4294901760, %v2867_v16  ;;  %325 = vperm.xlu1 %2573, %v312_v35   ;;  %v994_v45 = vld [vmem:[%s3218_s4] sm:$0xff]  ;;  %v1593_v63 = vld [vmem:[%s3220_s6 + $0x8] sm:$0xff] }
  0x40   : > { %v2903_v36 = vpack.c.bf16 %v357_v26, %v353_v13  ;;  %v2905_v37 = vsub.f32 %v343_v23, %v357_v26  ;;  %v2907_v38 = vsub.f32 %v303_v10, %v355_v28  ;;  %v2909_v39 = vand.u32 4294901760, %v333_v33  ;;  %v995_v54 = vld [vmem:[%s3218_s4 + $0x8] sm:$0x7f]  ;;  %v1592_v20 = vld [vmem:[%s3220_s6] sm:$0xff]  ;;  %s2245_s29 = sshll.u32 %s3158_s23, 4  ;;  %s2232_s28 = scalar_lea.sflag [#allocation4], %s2855_s17  ;;  %s3164_s29 = int_to_ptr.vmem [resolvable:$true] %s2245_s29 }
  0x41   : > { %v2914_v41 = vpack.c.bf16 %v359_v31, %v355_v28  ;;  %v2916_v42 = vsub.f32 %v340_v27, %v359_v31  ;;  %v2919_v43 = vsub.f32 %v330_v29, %v2896_v32  ;;  %v454_v44 = vsub.f32 %v2867_v16, %v453_v34  ;;  %s2632_s16 = scalar_lea.vmem %s3164_s29, 512  ;;  %p3229_p10 = scmp.ne.s32.totalorder %s3225_s13, 0 }
  0x42   : > { %2339 = vmatprep.subr.bf16.mxu0 %v2903_v36  ;;  %v2929_v46 = vsub.f32 %v333_v33, %v2909_v39  ;;  %v465_v47 = vand.u32 4294901760, %v2869_v17  ;;  %v459_v48 = vand.u32 4294901760, %v2871_v18  ;;  %v471_v49 = vand.u32 4294901760, %v2881_v22  ;;  %320 = vperm.xlu0 %2572, %v311_v30   ;;  %p2633_p6 = scmp.ne.s32.totalorder %s3164_s29, %s2632_s16  ;;  %s2706_s18 = smov [#allocation5]  }
  0x43   : > { %2341 = vmatpush1.bf16.msra.mxu0 %v2914_v41  ;;  %v420_v50 = vand.u32 4294901760, %v2919_v43  ;;  %v455_v51 = vand.u32 4294901760, %v454_v44  ;;  %v336_v52 = vsel %vm328_vm1, %v309_v40, 0  ;;  %v477_v53 = vand.u32 4294901760, %v2884_v24  ;;  %998 = vperm.xlu1 %2573, %v994_v45   ;;  %s2636_s15 = sshll.u32 %s2706_s18, 4  ;;  %s2637_s15 = int_to_ptr.vmem [resolvable:$false] %s2636_s15 }
  0x44   : > { %v431_v55 = vand.u32 4294901760, %v2929_v46  ;;  %v466_v56 = vsub.f32 %v2869_v17, %v465_v47  ;;  %v460_v57 = vsub.f32 %v2871_v18, %v459_v48  ;;  %v472_v58 = vsub.f32 %v2881_v22, %v471_v49  ;;  %p2634_p11 = pnand %p2633_p6, %p3229_p10  ;;  %s2638_s19 = scalar_lea.vmem %s2637_s15, 1024 }
  0x45   : > { %v421_v59 = vsub.f32 %v2919_v43, %v420_v50  ;;  %v2954_v60 = vand.u32 4294901760, %v336_v52  ;;  %v478_v61 = vsub.f32 %v2884_v24, %v477_v53  ;;  %v489_v62 = vand.u32 4294901760, %v2905_v37  ;;  %p2639_p8 = scmp.lt.s32.totalorder %s3164_s29, %s2637_s15  ;;  %p2640_p9 = scmp.lt.s32.totalorder %s2638_s19, %s2632_s16 }
  0x46   : > { %v432_v1 = vsub.f32 %v2929_v46, %v431_v55  ;;  %v467_v2 = vand.u32 4294901760, %v466_v56  ;;  %v461_v3 = vand.u32 4294901760, %v460_v57  ;;  %v473_v4 = vand.u32 4294901760, %v472_v58  ;;  %1003 = vperm.xlu0 %2572, %v995_v54   ;;  %p2635_p12 = pneg %p2634_p11 }
  0x47   : > { %v422_v5 = vand.u32 4294901760, %v421_v59  ;;  %v2967_v6 = vsub.f32 %v336_v52, %v2954_v60  ;;  %v479_v7 = vand.u32 4294901760, %v478_v61  ;;  %v490_v8 = vsub.f32 %v2905_v37, %v489_v62  ;;  %1601 = vperm.xlu1 %2573, %v1593_v63   ;;  %p2641_p0 = por %p2640_p9, %p2639_p8 }
  0x48   : > { %v2342_v9 = vpack.c.bf16 %v467_v2, %v455_v51  ;;  %v2344_v10 = vpack.c.bf16 %v473_v4, %v461_v3  ;;  %v483_v11 = vand.u32 4294901760, %v2907_v38  ;;  %v433_v12 = vand.u32 4294901760, %v432_v1 }
  0x49   : > { %423 = vmatmul.mubr.f32.vlgmr.msra.gmra.mrb[0].mxu0 %v422_v5  ;;  %v442_v13 = vand.u32 4294901760, %v2967_v6  ;;  %v491_v14 = vand.u32 4294901760, %v490_v8  ;;  %v495_v19 = vand.u32 4294901760, %v2916_v42  ;;  %v2350_v33 = vpack.c.bf16 %v2869_v17, %v2867_v16  ;;  %p2642_p2 = pnand %p2641_p0, %p2635_p12 }
  0x4a   : > { %428 = vmatprep.mubr.f32.mxu0 %v2704_v0  ;;  %2343 = vmatprep.subr.bf16.mxu0 %v2342_v9  ;;  %v484_v23 = vsub.f32 %v2907_v38, %v483_v11  ;;  %v2352_v35 = vpack.c.bf16 %v2881_v22, %v2871_v18  ;;  %v2354_v40 = vpack.c.bf16 %v2905_v37, %v2884_v24  ;;  %v992_v18 = vld [vmem:[%s3217_s3] sm:$0xff]  ;;  %vm1006_vm2 = vcmask 162816  }
  0x4b   : > { %2345 = vmatpush1.bf16.msra.mxu0 %v2344_v10  ;;  %v443_v25 = vsub.f32 %v2967_v6, %v442_v13  ;;  %v2346_v26 = vpack.c.bf16 %v491_v14, %v479_v7  ;;  %v496_v27 = vsub.f32 %v2916_v42, %v495_v19  ;;  %1596 = vperm.xlu0 %2572, %v1592_v20   ;;  %vm1013_vm3 = vcmask 1043456  }
  0x4c   : > { %v485_v28 = vand.u32 4294901760, %v484_v23  ;;  %v2356_v44 = vpack.c.bf16 %v2916_v42, %v2907_v38  ;;  %v2366_v38 = vpack.c.bf16 %v465_v47, %v453_v34  ;;  %v2368_v42 = vpack.c.bf16 %v471_v49, %v459_v48 }
  0x4d   : > { %434 = vmatmul.mubr.f32.gmra.mrb[2].mxu0 %v433_v12  ;;  %v444_v29 = vand.u32 4294901760, %v443_v25  ;;  %2347 = vmatprep.subr.bf16.mxu0 %v2346_v26  ;;  %v497_v30 = vand.u32 4294901760, %v496_v27  ;;  %v2370_v16 = vpack.c.bf16 %v489_v62, %v477_v53  ;;  %v2372_v17 = vpack.c.bf16 %v495_v19, %v483_v11 }
  0x4e   : > { %439 = vmatprep.mubr.f32.mxu0 %v2704_v0  ;;  %v1008_v34 = vsel %vm1006_vm2, %v992_v18, 0  ;;  %vm1604_vm4 = vcmask 121856   ;;  %vm1611_vm5 = vcmask 1046528  }
  0x4f   : > { %v2348_v31 = vpack.c.bf16 %v497_v30, %v485_v28 }
  0x51   : > { %445 = vmatmul.mubr.f32.gmra.mrb[4].mxu0 %v444_v29 }
  0x52   : > { %2349 = vmatpush1.bf16.msra.mxu0 %v2348_v31  ;;  %555 = vmatprep.mubr.f32.mxu0 %v2704_v0 }
  0x53   : > { %2351 = vmatprep.subr.bf16.mxu0 %v2350_v33 }
  0x55   : > { %557 = vmatmul.mubr.f32.vlgmr.msra.gmra.mrb[0].mxu0 %v2896_v32 }
  0x56   : > { %562 = vmatprep.mubr.f32.mxu0 %v2704_v0  ;;  %2353 = vmatpush1.bf16.msra.mxu0 %v2352_v35 }
  0x57   : > { %2355 = vmatprep.subr.bf16.mxu0 %v2354_v40 }
  0x59   : > { %564 = vmatmul.mubr.f32.gmra.mrb[2].mxu0 %v2909_v39 }
  0x5a   : > { %569 = vmatprep.mubr.f32.mxu0 %v2704_v0  ;;  %2357 = vmatpush1.bf16.msra.mxu0 %v2356_v44 }
  0x5b   : > { %2359 = vmatprep.subr.bf16.mxu0 %v2865_v15 }
  0x5d   : > { %571 = vmatmul.mubr.f32.gmra.mrb[4].mxu0 %v2954_v60 }
  0x5e   : > { %657 = vmatprep.mubr.f32.mxu0 %v2704_v0 }
  0x61   : > { %660 = vmatmul.mubr.f32.vlgmr.msra.gmra.mrb[0].mxu0 %v2919_v43  ;;  %v3047_v43 = vand.u32 4294901760, %v1008_v34 }
  0x62   : > { %665 = vmatprep.mubr.f32.mxu0 %v2704_v0  ;;  %2361 = vmatpush1.bf16.msra.mxu0 %v2879_v21 }
  0x63   : > { %2363 = vmatprep.subr.bf16.mxu0 %v2903_v36  ;;  %v3053_v51 = vsub.f32 %v1008_v34, %v3047_v43 }
  0x65   : > { %668 = vmatmul.mubr.f32.gmra.mrb[2].mxu0 %v2929_v46  ;;  %v993_v46 = vld [vmem:[%s3217_s3 + $0x8] sm:$0x7f] }
  0x66   : > { %673 = vmatprep.mubr.f32.mxu0 %v2704_v0  ;;  %2365 = vmatpush1.bf16.msra.mxu0 %v2914_v41  ;;  %v1011_v53 = vsel %vm1006_vm2, %v993_v46, 0 }
  0x67   : > { %2367 = vmatprep.subr.bf16.mxu0 %v2366_v38  ;;  %v3057_v56 = vand.u32 4294901760, %v1011_v53 }
  0x69   : > { %676 = vmatmul.mubr.f32.gmra.mrb[4].mxu0 %v2967_v6  ;;  %v3067_v1 = vsub.f32 %v1011_v53, %v3057_v56 }
  0x6a   : > { %754 = vmatprep.mubr.f32.mxu0 %v2704_v0 }
  0x6d   : > { %758 = vmatmul.mubr.f32.vlgmr.msra.gmra.mrb[0].mxu0 %v420_v50 }
  0x6e   : > { %763 = vmatprep.mubr.f32.mxu0 %v2704_v0  ;;  %2369 = vmatpush1.bf16.msra.mxu0 %v2368_v42 }
  0x6f   : > { %2371 = vmatprep.subr.bf16.mxu0 %v2370_v16 }
  0x71   : > { %767 = vmatmul.mubr.f32.gmra.mrb[2].mxu0 %v431_v55  ;;  %v1093_v55 = vand.u32 4294901760, %v3053_v51 }
  0x72   : > { %772 = vmatprep.mubr.f32.mxu0 %v2704_v0  ;;  %2373 = vmatpush1.bf16.msra.mxu0 %v2372_v17 }
  0x73   : > { %2375 = vmatprep.subr.bf16.mxu0 %v2865_v15  ;;  %v1094_v62 = vsub.f32 %v3053_v51, %v1093_v55 }
  0x75   : > { %776 = vmatmul.mubr.f32.gmra.mrb[4].mxu0 %v442_v13  ;;  %v1095_v11 = vand.u32 4294901760, %v1094_v62  ;;  %v1104_v13 = vand.u32 4294901760, %v3067_v1 }
  0x76   : > { %870 = vmatprep.mubr.f32.mxu0 %v2704_v0 }
  0x77   : > { %v1105_v44 = vsub.f32 %v3067_v1, %v1104_v13 }
  0x79   : > { %872 = vmatmul.mubr.f32.vlgmr.msra.gmra.mrb[0].mxu0 %v2896_v32 }
  0x7a   : > { %877 = vmatprep.mubr.f32.mxu0 %v2704_v0  ;;  %2377 = vmatpush1.bf16.msra.mxu0 %v2879_v21 }
  0x7b   : > { %2379 = vmatprep.subr.bf16.mxu0 %v2903_v36 }
  0x7d   : > { %879 = vmatmul.mubr.f32.gmra.mrb[2].mxu0 %v2909_v39 }
  0x7e   : > { %884 = vmatprep.mubr.f32.mxu0 %v2704_v0  ;;  %2381 = vmatpush1.bf16.msra.mxu0 %v2914_v41 }
  0x81   : > { %886 = vmatmul.mubr.f32.gmra.mrb[4].mxu0 %v2954_v60 }
  0x82   : > { %964 = vmatprep.mubr.f32.mxu0 %v2704_v0 }
  0x85   : > { %966 = vmatmul.mubr.f32.vlgmr.msra.gmra.mrb[0].mxu0 %v2896_v32 }
  0x86   : > { %971 = vmatprep.mubr.f32.mxu0 %v2704_v0 }
  0x89   : > { %973 = vmatmul.mubr.f32.gmra.mrb[2].mxu0 %v2909_v39 }
  0x8a   : > { %978 = vmatprep.mubr.f32.mxu0 %v2704_v0 }
  0x8d   : > { %980 = vmatmul.mubr.f32.gmra.mrb[4].mxu0 %v2954_v60 }
  0x8e   : > { %1090 = vmatprep.mubr.f32.mxu0 %v2704_v0 }
  0xbd   : > { %v316_v15 = vpop.permute.xlu0 %315 }
  0xbe   : > { %v326_v47 = vpop.permute.xlu1 %325 }
  0xc1   : > { %v321_v36 = vpop.permute.xlu0 %320 }
 0x158   : > { %v967_v21 = vpop.f32.mrb[0].mxu0 }
 0x159   : > { %v2434_v22 = vadd.f32 %v967_v21, %v316_v15  ;;  %v969_v24 = vpop.f32.mrb[1].mxu0 }
 0x15a   : > { %v2435_v32 = vadd.f32 %v969_v24, %v316_v15 }
 0x15b   : > { %2574 = vtanh.f32 %v2434_v22 }
 0x15c   : > { %2576 = vtanh.f32 %v2435_v32  ;;  %v974_v37 = vpop.f32.mrb[2].mxu0 }
 0x15d   : > { %v2436_v39 = vadd.f32 %v974_v37, %v321_v36  ;;  %v976_v41 = vpop.f32.mrb[3].mxu0 }
 0x15e   : > { %v2437_v45 = vadd.f32 %v976_v41, %v321_v36  ;;  %v1106_v36 = vand.u32 4294901760, %v1105_v44 }
 0x15f   : > { %2578 = vtanh.f32 %v2436_v39 }
 0x160   : > { %2580 = vtanh.f32 %v2437_v45  ;;  %v981_v48 = vpop.f32.mrb[4].mxu0 }
 0x161   : > { %v2438_v49 = vadd.f32 %v981_v48, %v326_v47  ;;  %v983_v50 = vpop.f32.mrb[5].mxu0 }
 0x162   : > { %v2439_v52 = vadd.f32 %v983_v50, %v326_v47 }
 0x163   : > { %2582 = vtanh.f32 %v2438_v49 }
 0x164   : > { %2584 = vtanh.f32 %v2439_v52 }
 0x165   : > { %v2575_v54 = vpop.eup %2574 }
 0x166   : > { %v2577_v57 = vpop.eup %2576  ;;  %v1022_v58 = vand.u32 4294901760, %v2575_v54 }
 0x167   : > { %v1020_v59 = vand.u32 4294901760, %v2577_v57 }
 0x168   : > { %v3059_v60 = vsub.f32 %v2575_v54, %v1022_v58 }
 0x169   : > { %v2579_v61 = vpop.eup %2578  ;;  %v3064_v63 = vsub.f32 %v2577_v57, %v1020_v59 }
 0x16a   : > { %v2581_v2 = vpop.eup %2580  ;;  %v1026_v3 = vand.u32 4294901760, %v2579_v61  ;;  %v1121_v4 = vand.u32 4294901760, %v3059_v60 }
 0x16b   : > { %v1024_v5 = vand.u32 4294901760, %v2581_v2  ;;  %v1115_v6 = vand.u32 4294901760, %v3064_v63 }
 0x16c   : > { %v3071_v7 = vpack.c.bf16 %v1026_v3, %v1022_v58  ;;  %v1132_v8 = vsub.f32 %v2579_v61, %v1026_v3  ;;  %v1122_v20 = vsub.f32 %v3059_v60, %v1121_v4  ;;  %v1004_v61 = vpop.permute.xlu0 %1003 }
 0x16d   : > { %v2583_v9 = vpop.eup %2582  ;;  %v3073_v10 = vpack.c.bf16 %v1024_v5, %v1020_v59  ;;  %v1126_v12 = vsub.f32 %v2581_v2, %v1024_v5  ;;  %v1116_v28 = vsub.f32 %v3064_v63, %v1115_v6 }
 0x16e   : > { %v2585_v14 = vpop.eup %2584  ;;  %v1015_v19 = vsel %vm1013_vm3, %v2583_v9, 0  ;;  %v1133_v23 = vand.u32 4294901760, %v1132_v8  ;;  %v2392_v25 = vpack.c.bf16 %v1132_v8, %v3059_v60  ;;  %v1123_v16 = vand.u32 4294901760, %v1122_v20 }
 0x16f   : > { %v1018_v26 = vsel %vm1013_vm3, %v2585_v14, 0  ;;  %2383 = vmatprep.subr.bf16.mxu0 %v3073_v10  ;;  %v3079_v27 = vand.u32 4294901760, %v1015_v19  ;;  %v1127_v29 = vand.u32 4294901760, %v1126_v12  ;;  %v2390_v33 = vpack.c.bf16 %v1126_v12, %v3064_v63 }
 0x170   : > { %2385 = vmatpush1.bf16.msra.mxu0 %v3071_v7  ;;  %v3083_v30 = vand.u32 4294901760, %v1018_v26  ;;  %v1134_v31 = vsub.f32 %v1132_v8, %v1133_v23  ;;  %v2400_v35 = vpack.c.bf16 %v1133_v23, %v1121_v4  ;;  %v1117_v18 = vand.u32 4294901760, %v1116_v28 }
 0x171   : > { %v1128_v40 = vsub.f32 %v1126_v12, %v1127_v29  ;;  %v1144_v38 = vsub.f32 %v1015_v19, %v3079_v27  ;;  %v2398_v42 = vpack.c.bf16 %v1127_v29, %v1115_v6  ;;  %v1591_v6 = vld [vmem:[%s3219_s5 + $0x8] sm:$0xff] }
 0x172   : > { %1029 = vmatprep.subr.mxu0 %v3083_v30  ;;  %v1135_v17 = vand.u32 4294901760, %v1134_v31  ;;  %v1138_v15 = vsub.f32 %v1018_v26, %v3083_v30 }
 0x173   : > { %v1129_v21 = vand.u32 4294901760, %v1128_v40  ;;  %v1145_v22 = vand.u32 4294901760, %v1144_v38 }
 0x174   : > { %1031 = vmatpush1.msra.mxu0 %v3079_v27  ;;  %v2388_v24 = vpack.c.bf16 %v1135_v17, %v1123_v16  ;;  %v1139_v32 = vand.u32 4294901760, %v1138_v15 }
 0x175   : > { %1096 = vmatmul.mubr.f32.vlgmr.msra.gmra.mrb[6].mxu0 %v1095_v11  ;;  %2403 = vmatprep.subr.bf16.mxu0 %v3073_v10  ;;  %v2386_v34 = vpack.c.bf16 %v1129_v21, %v1117_v18  ;;  %v1146_v39 = vsub.f32 %v1144_v38, %v1145_v22 }
 0x176   : > { %2405 = vmatpush1.bf16.msra.mxu0 %v3071_v7  ;;  %1101 = vmatprep.mubr.f32.mxu0 %v2704_v0  ;;  %v1140_v37 = vsub.f32 %v1138_v15, %v1139_v32 }
 0x177   : > { %2387 = vmatprep.subr.bf16.mxu1 %v2386_v34  ;;  %1510 = vmatprep.subr.mxu0 %v3083_v30  ;;  %v1147_v45 = vand.u32 4294901760, %v1146_v39 }
 0x178   : > { %2389 = vmatpush1.bf16.msra.mxu1 %v2388_v24  ;;  %v1141_v41 = vand.u32 4294901760, %v1140_v37 }
 0x179   : > { %1107 = vmatmul.mubr.f32.gmra.mrb[8].mxu0 %v1106_v36 }
 0x17a   : > { %1142 = vmatprep.subr.mxu1 %v1141_v41  ;;  %1512 = vmatpush1.msra.mxu0 %v3079_v27 }
 0x17b   : > { %1571 = vmatprep.mubr.f32.mxu0 %v2704_v0 }
 0x17c   : > { %1148 = vmatpush1.msra.mxu1 %v1147_v45 }
 0x17d   : > { %1209 = vmatmul.mubr.f32.vlgmr.msra.gmra.mrb[0].mxu1 %v3047_v43  ;;  %2391 = vmatprep.subr.bf16.mxu1 %v2390_v33 }
 0x17e   : > { %2393 = vmatpush1.bf16.msra.mxu1 %v2392_v25  ;;  %1214 = vmatprep.mubr.f32.mxu1 %v2704_v0 }
 0x17f   : > { %1236 = vmatprep.subr.mxu1 %v1138_v15  ;;  %1573 = vmatmul.mubr.f32.vlgmr.msra.gmra.mrb[10].mxu0 %v3047_v43 }
 0x181   : > { %1216 = vmatmul.mubr.f32.gmra.mrb[2].mxu1 %v3057_v56 }
 0x182   : > { %1239 = vmatpush1.msra.mxu1 %v1144_v38  ;;  %1298 = vmatprep.mubr.f32.mxu1 %v2704_v0 }
 0x183   : > { %2395 = vmatprep.subr.bf16.mxu1 %v3073_v10 }
 0x185   : > { %1301 = vmatmul.mubr.f32.vlgmr.msra.gmra.mrb[0].mxu1 %v3053_v51  ;;  %v999_v51 = vpop.permute.xlu1 %998 }
 0x186   : > { %2397 = vmatpush1.bf16.msra.mxu1 %v3071_v7  ;;  %1306 = vmatprep.mubr.f32.mxu1 %v2704_v0 }
 0x187   : > { %1324 = vmatprep.subr.mxu1 %v3083_v30 }
 0x189   : > { %1309 = vmatmul.mubr.f32.gmra.mrb[2].mxu1 %v3067_v1 }
 0x18a   : > { %1326 = vmatpush1.msra.mxu1 %v3079_v27  ;;  %1385 = vmatprep.mubr.f32.mxu1 %v2704_v0 }
 0x18b   : > { %2399 = vmatprep.subr.bf16.mxu1 %v2398_v42 }
 0x18d   : > { %1389 = vmatmul.mubr.f32.vlgmr.msra.gmra.mrb[0].mxu1 %v1093_v55 }
 0x18e   : > { %2401 = vmatpush1.bf16.msra.mxu1 %v2400_v35  ;;  %1394 = vmatprep.mubr.f32.mxu1 %v2704_v0 }
 0x18f   : > { %1423 = vmatprep.subr.mxu1 %v1139_v32 }
 0x191   : > { %1398 = vmatmul.mubr.f32.gmra.mrb[2].mxu1 %v1104_v13 }
 0x192   : > { %1427 = vmatpush1.msra.mxu1 %v1145_v22  ;;  %1486 = vmatprep.mubr.f32.mxu1 %v2704_v0 }
 0x193   : > { %2430 = vmatprep.subr.bf16.mxu1 %v3073_v10  ;;  %v1609_v10 = vsel %vm1604_vm4, %v1591_v6, 0 }
 0x194   : > { %v3137_v14 = vand.u32 4294901760, %v1609_v10 }
 0x195   : > { %1488 = vmatmul.mubr.f32.vlgmr.msra.gmra.mrb[0].mxu1 %v3047_v43 }
 0x196   : > { %2432 = vmatpush1.bf16.msra.mxu1 %v3071_v7  ;;  %1493 = vmatprep.mubr.f32.mxu1 %v2704_v0  ;;  %v1699_v25 = vsub.f32 %v1609_v10, %v3137_v14 }
 0x197   : > { %2431 = vmatprep.subr.mxu1 %v3083_v30 }
 0x198   : > { %v1700_v40 = vand.u32 4294901760, %v1699_v25 }
 0x199   : > { %1495 = vmatmul.mubr.f32.gmra.mrb[2].mxu1 %v3057_v56 }
 0x19a   : > { %2433 = vmatpush1.msra.mxu1 %v3079_v27  ;;  %1578 = vmatprep.mubr.f32.mxu1 %v2704_v0  ;;  %v1701_v24 = vsub.f32 %v1699_v25, %v1700_v40 }
 0x1a1   : > { %1580 = vmatmul.mubr.f32.vlgmr.msra.gmra.mrb[2].mxu1 %v3057_v56  ;;  %v1590_v56 = vld [vmem:[%s3219_s5] sm:$0xff] }
 0x1a2   : > { %1686 = vmatprep.mubr.f32.mxu1 %v2704_v0  ;;  %v1606_v2 = vsel %vm1604_vm4, %v1590_v56, 0 }
 0x1a3   : > { %v3134_v7 = vand.u32 4294901760, %v1606_v2 }
 0x1a5   : > { %v1688_v12 = vsub.f32 %v1606_v2, %v3134_v7 }
 0x1a7   : > { %v1689_v20 = vand.u32 4294901760, %v1688_v12 }
 0x1a9   : > { %v1690_v31 = vsub.f32 %v1688_v12, %v1689_v20 }
 0x1ab   : > { %v1691_v15 = vand.u32 4294901760, %v1690_v31 }
 0x248   : > { %v1097_v46 = vpop.f32.mrb[6].mxu0 }
 0x249   : > { %v1099_v47 = vpop.f32.mrb[7].mxu0  ;;  %v1098_v52 = vadd.f32 %v1097_v46, %v999_v51 }
 0x24a   : > { %v1100_v53 = vadd.f32 %v1099_v47, %v999_v51 }
 0x24c   : > { %v1108_v48 = vpop.f32.mrb[8].mxu0 }
 0x24d   : > { %v1110_v43 = vpop.f32.mrb[9].mxu0  ;;  %v1109_v62 = vadd.f32 %v1108_v48, %v1004_v61  ;;  %v1702_v48 = vand.u32 4294901760, %v1701_v24 }
 0x24e   : > { %v1111_v63 = vadd.f32 %v1110_v43, %v1004_v61 }
 0x252   : > { %v1574_v49 = vpop.f32.mrb[10].mxu0 }
 0x253   : > { %v1576_v50 = vpop.f32.mrb[11].mxu0 }
 0x268   : > { %v1489_v54 = vpop.f32.mrb[0].mxu1 }
 0x269   : > { %v2441_v55 = vadd.f32 %v1489_v54, %v1098_v52  ;;  %v1491_v57 = vpop.f32.mrb[1].mxu1  ;;  %v1597_v52 = vpop.permute.xlu0 %1596 }
 0x26a   : > { %v2444_v58 = vadd.f32 %v1491_v57, %v1100_v53 }
 0x26b   : > { %v2442_v59 = vadd.f32 %v2441_v55, %v1574_v49 }
 0x26c   : > { %v2445_v60 = vadd.f32 %v2444_v58, %v1576_v50  ;;  %v1602_v58 = vpop.permute.xlu1 %1601 }
 0x26d   : > { %2586 = vtanh.f32 %v2442_v59 }
 0x26e   : > { %2588 = vtanh.f32 %v2445_v60 }
 0x274   : > { %v1581_v1 = vpop.f32.mrb[2].mxu1 }
 0x275   : > { %v2447_v3 = vadd.f32 %v1581_v1, %v1109_v62  ;;  %v1583_v4 = vpop.f32.mrb[3].mxu1 }
 0x276   : > { %v2449_v5 = vadd.f32 %v1583_v4, %v1111_v63 }
 0x277   : > { %2590 = vtanh.f32 %v2447_v3  ;;  %v2587_v8 = vpop.eup %2586 }
 0x278   : > { %2592 = vtanh.f32 %v2449_v5  ;;  %v2589_v9 = vpop.eup %2588  ;;  %v1620_v11 = vand.u32 4294901760, %v2587_v8 }
 0x279   : > { %v1618_v13 = vand.u32 4294901760, %v2589_v9 }
 0x27a   : > { %v1716_v19 = vsub.f32 %v2587_v8, %v1620_v11 }
 0x27b   : > { %v1710_v23 = vsub.f32 %v2589_v9, %v1618_v13 }
 0x27c   : > { %v1717_v33 = vand.u32 4294901760, %v1716_v19 }
 0x27d   : > { %v1711_v44 = vand.u32 4294901760, %v1710_v23 }
 0x27e   : > { %v1718_v18 = vsub.f32 %v1716_v19, %v1717_v33 }
 0x27f   : > { %v1712_v32 = vsub.f32 %v1710_v23, %v1711_v44 }
 0x280   : > { %v1719_v46 = vand.u32 4294901760, %v1718_v18 }
 0x281   : > { %v2591_v26 = vpop.eup %2590  ;;  %v1713_v43 = vand.u32 4294901760, %v1712_v32 }
 0x282   : > { %v2593_v27 = vpop.eup %2592  ;;  %v1613_v28 = vsel %vm1611_vm5, %v2591_v26, 0 }
 0x283   : > { %v1616_v29 = vsel %vm1611_vm5, %v2593_v27, 0  ;;  %v1624_v30 = vand.u32 4294901760, %v1613_v28 }
 0x284   : > { %v1622_v35 = vand.u32 4294901760, %v1616_v29 }
 0x285   : > { %v2408_v38 = vpack.c.bf16 %v1624_v30, %v1620_v11  ;;  %v1728_v42 = vsub.f32 %v1613_v28, %v1624_v30 }
 0x286   : > { %v2406_v16 = vpack.c.bf16 %v1622_v35, %v1618_v13  ;;  %v1722_v17 = vsub.f32 %v1616_v29, %v1622_v35 }
 0x287   : > { %v1729_v21 = vand.u32 4294901760, %v1728_v42  ;;  %v2416_v22 = vpack.c.bf16 %v1728_v42, %v1716_v19 }
 0x288   : > { %2407 = vmatprep.subr.bf16.mxu1 %v2406_v16  ;;  %v1723_v34 = vand.u32 4294901760, %v1722_v17  ;;  %v2414_v36 = vpack.c.bf16 %v1722_v17, %v1710_v23 }
 0x289   : > { %2409 = vmatpush1.bf16.msra.mxu1 %v2408_v38  ;;  %v1730_v37 = vsub.f32 %v1728_v42, %v1729_v21  ;;  %v2424_v39 = vpack.c.bf16 %v1729_v21, %v1717_v33 }
 0x28a   : > { %v1724_v41 = vsub.f32 %v1722_v17, %v1723_v34  ;;  %v2422_v45 = vpack.c.bf16 %v1723_v34, %v1711_v44 }
 0x28b   : > { %v1731_v47 = vand.u32 4294901760, %v1730_v37 }
 0x28c   : > { %1692 = vmatmul.mubr.f32.vlgmr.msra.gmra.mrb[4].mxu1 %v1691_v15  ;;  %v1725_v49 = vand.u32 4294901760, %v1724_v41 }
 0x28d   : > { %1697 = vmatprep.mubr.f32.mxu1 %v2704_v0  ;;  %v2412_v50 = vpack.c.bf16 %v1731_v47, %v1719_v46 }
 0x28e   : > { %v2410_v51 = vpack.c.bf16 %v1725_v49, %v1713_v43 }
 0x290   : > { %1703 = vmatmul.mubr.f32.gmra.mrb[6].mxu1 %v1702_v48  ;;  %2411 = vmatprep.subr.bf16.mxu1 %v2410_v51 }
 0x291   : > { %2413 = vmatpush1.bf16.msra.mxu1 %v2412_v50  ;;  %1793 = vmatprep.mubr.f32.mxu1 %v2704_v0 }
 0x292   : > { %2415 = vmatprep.subr.bf16.mxu1 %v2414_v36 }
 0x294   : > { %1795 = vmatmul.mubr.f32.vlgmr.msra.gmra.mrb[4].mxu1 %v3134_v7 }
 0x295   : > { %2417 = vmatpush1.bf16.msra.mxu1 %v2416_v22  ;;  %1800 = vmatprep.mubr.f32.mxu1 %v2704_v0 }
 0x296   : > { %2419 = vmatprep.subr.bf16.mxu1 %v2406_v16 }
 0x298   : > { %1802 = vmatmul.mubr.f32.gmra.mrb[6].mxu1 %v3137_v14 }
 0x299   : > { %1880 = vmatprep.mubr.f32.mxu1 %v2704_v0 }
 0x29c   : > { %1883 = vmatmul.mubr.f32.vlgmr.msra.gmra.mrb[4].mxu1 %v1688_v12 }
 0x29d   : > { %2421 = vmatpush1.bf16.msra.mxu1 %v2408_v38  ;;  %1888 = vmatprep.mubr.f32.mxu1 %v2704_v0 }
 0x29e   : > { %2423 = vmatprep.subr.bf16.mxu1 %v2422_v45 }
 0x2a0   : > { %1891 = vmatmul.mubr.f32.gmra.mrb[6].mxu1 %v1699_v25 }
 0x2a1   : > { %1965 = vmatprep.mubr.f32.mxu1 %v2704_v0 }
 0x2a4   : > { %1969 = vmatmul.mubr.f32.vlgmr.msra.gmra.mrb[4].mxu1 %v1689_v20 }
 0x2a5   : > { %2425 = vmatpush1.bf16.msra.mxu1 %v2424_v39  ;;  %1974 = vmatprep.mubr.f32.mxu1 %v2704_v0 }
 0x2a6   : > { %2427 = vmatprep.subr.bf16.mxu1 %v2406_v16 }
 0x2a8   : > { %1978 = vmatmul.mubr.f32.gmra.mrb[6].mxu1 %v1700_v40 }
 0x2a9   : > { %2060 = vmatprep.mubr.f32.mxu1 %v2704_v0 }
 0x2ac   : > { %2062 = vmatmul.mubr.f32.vlgmr.msra.gmra.mrb[4].mxu1 %v3134_v7 }
 0x2ad   : > { %2429 = vmatpush1.bf16.msra.mxu1 %v2408_v38  ;;  %2067 = vmatprep.mubr.f32.mxu1 %v2704_v0 }
 0x2b0   : > { %2069 = vmatmul.mubr.f32.gmra.mrb[6].mxu1 %v3137_v14 }
 0x2b1   : > { %2143 = vmatprep.mubr.f32.mxu1 %v2704_v0 }
 0x2b4   : > { %2145 = vmatmul.mubr.f32.vlgmr.msra.gmra.mrb[4].mxu1 %v3134_v7 }
 0x2b5   : > { %2150 = vmatprep.mubr.f32.mxu1 %v2704_v0 }
 0x2b8   : > { %2152 = vmatmul.mubr.f32.gmra.mrb[6].mxu1 %v3137_v14 }
 0x387   : > { %v2146_v53 = vpop.f32.mrb[4].mxu1 }
 0x388   : > { %v2450_v54 = vadd.f32 %v2146_v53, %v1597_v52  ;;  %v2148_v55 = vpop.f32.mrb[5].mxu1 }
 0x389   : > { %v2451_v57 = vadd.f32 %v2148_v55, %v1597_v52 }
 0x38a   : > { %2227 = vst [vmem:[%s3158_s23] sm:$0xff] %v2450_v54 }
 0x38b   : > { %2228 = vst [vmem:[%s3158_s23 + $0x8] sm:$0xff] %v2451_v57  ;;  %v2153_v59 = vpop.f32.mrb[6].mxu1 }
 0x38c   : > { %v2452_v60 = vadd.f32 %v2153_v59, %v1602_v58  ;;  %v2155_v56 = vpop.f32.mrb[7].mxu1 }
 0x38d   : > { %v2453_v61 = vadd.f32 %v2155_v56, %v1602_v58 }
 0x38e   : > { %v2164_v0 = vand.u32 2147483647, %v2452_v60  ;;  %v2160_v25 = vmax.f32 %v2452_v60, 0.0 }
 0x38f   : > { %v2165_v62 = vand.u32 2147483647, %v2453_v61  ;;  %v2161_v29 = vmax.f32 %v2453_v61, 0.0 }
 0x390   : > { %v2168_v63 = vsub.f32 0.0, %v2164_v0 }
 0x391   : > { %v2169_v1 = vsub.f32 0.0, %v2165_v62 }
 0x392   : > { %v2174_v2 = vmul.f32 1.442695, %v2168_v63 }
 0x393   : > { %v2176_v3 = vmul.f32 1.442695, %v2169_v1 }
 0x394   : > { %2594 = vpow2.f32 %v2174_v2 }
 0x395   : > { %2596 = vpow2.f32 %v2176_v3 }
 0x39e   : > { %v2595_v4 = vpop.eup %2594 }
 0x39f   : > { %v2597_v5 = vpop.eup %2596  ;;  %v2196_v6 = vadd.f32 1.0, %v2595_v4  ;;  %v2199_v8 = vmul.f32 -0.5, %v2595_v4  ;;  %v2202_v11 = vand.u32 2147483647, %v2595_v4 }
 0x3a0   : > { %v2205_v7 = vadd.f32 1.0, %v2597_v5  ;;  %v2208_v9 = vmul.f32 -0.5, %v2597_v5  ;;  %v2211_v13 = vand.u32 2147483647, %v2597_v5 }
 0x3a1   : > { %2598 = vlog2.f32 %v2196_v6  ;;  %v2200_v10 = vadd.f32 1.0, %v2199_v8  ;;  %vm2203_vm6 = vcmp.lt.f32.partialorder %v2202_v11, 0.0004427343 }
 0x3a2   : > { %2600 = vlog2.f32 %v2205_v7  ;;  %v2209_v12 = vadd.f32 1.0, %v2208_v9  ;;  %vm2212_vm7 = vcmp.lt.f32.partialorder %v2211_v13, 0.0004427343 }
 0x3a3   : > { %v2201_v23 = vmul.f32 %v2595_v4, %v2200_v10 }
 0x3a4   : > { %v2210_v27 = vmul.f32 %v2597_v5, %v2209_v12 }
 0x3ab   : > { %v2599_v14 = vpop.eup %2598 }
 0x3ac   : > { %v2601_v19 = vpop.eup %2600  ;;  %v2198_v20 = vmul.f32 0.6931472, %v2599_v14 }
 0x3ad   : > { %v2207_v26 = vmul.f32 0.6931472, %v2601_v19 }
 0x3ae   : > { %v2204_v28 = vsel %vm2203_vm6, %v2201_v23, %v2198_v20 }
 0x3af   : > { %v2216_v30 = vadd.f32 %v2204_v28, %v2160_v25  ;;  %v2213_v31 = vsel %vm2212_vm7, %v2210_v27, %v2207_v26 }
 0x3b0   : > { %v2217_v33 = vadd.f32 %v2213_v31, %v2161_v29 }
 0x3b1   : > { %2229 = vst [vmem:[%s3158_s23 + $0x10] sm:$0xff] %v2216_v30 }
 0x3b2   : > { %2230 = vst [vmem:[%s3158_s23 + $0x18] sm:$0xff] %v2217_v33 }
 0x3b3   : > { %2645 = shalt.err (!%p2642_p2)
}
 0x3b4   : > { %s2646_s12 = scalar_lea.hbm %s3169_s11, 512  ;;  %s2650_s23 = scalar_lea.hbm %s3221_s7, 1536 }
 0x3b5   : > { %p2647_p4 = scmp.ne.s32.totalorder %s3169_s11, %s2646_s12  ;;  %p2651_p13 = scmp.lt.u32.totalorder %s3169_s11, %s3221_s7 }
 0x3b6   : > { %p2652_p1 = scmp.lt.u32.totalorder %s2650_s23, %s2646_s12  ;;  %p2654_p6 = scmp.lt.u32.totalorder %s2646_s12, %s3169_s11 }
 0x3b7   : > { %p2648_p5 = pnand %p2647_p4, %p3229_p10 }
 0x3b8   : > { %p2653_p3 = por %p2652_p1, %p2651_p13 }
 0x3b9   : > { %p2649_p7 = pneg %p2648_p5 }
 0x3ba   : > { %p2655_p11 = por %p2654_p6, %p2653_p3 }
 0x3bc   : > { %p2656_p12 = pnand %p2655_p11, %p2649_p7 }
 0x3be   : > { %2659 = shalt.err (!%p2656_p12)
}
 0x3bf   : > { %s2707_s8 = smov 256   ;;  %s2708_s16 = smov 768  }
 0x3c0   : > { %s2709_s18 = smov 16  }
 0x3c1   : > { %2520 = dma.vmem_to_hbm [thread:$0]  (%p3229_p10), %s3164_s29, 512, %s3169_s11, %s2232_s28, %s2707_s8, %s2708_s16, %s2709_s18  }
 0x3c2 PF: > { %p2531_p8 = scmp.ge.s32.totalorder %s2698_s27, 2  ;;  %s2260_s15 = sand.u32 1, %s2686_s24  }
 0x3c3   : > { %p3230_p9 = scmp.ne.s32.totalorder %s3226_s14, 0  ;;  %s2261_s19 = scalar_lea.sflag [#allocation4], %s2260_s15 }
 0x3c5   : > { %p2527_p0 = pnand %p2531_p8, %p3230_p9 }
 0x3c7   : > { %2681 = dma.done.wait (!%p2527_p0), %s2261_s19, 512  }
 0x3c8   : > { %2683 = vsyncadd (!%p2527_p0), %s2261_s19, 4294966784  ;;  %p20_p2 = scmp.ge.s32.totalorder %s2775_s30, 5   ;;  %s3231_s24 = smov %s2690_s25 }
 0x3c9   : > { %s3232_s25 = smov %s2694_s26  ;;  %s3233_s26 = smov %s2787_s10 }
 0x3ca   : > { %s3234_s27 = smov %s2775_s30  ;;  %22 = sbr.rel (!%p20_p2) target bundleno = 5 (0x5), region = 93 }
 0x3d1   :  { %2266 = vsyncpa [#allocation3], 1 }
 0x3d2   :  { %2268 = vsyncpa [#allocation3 + $0x1], 1 }
 0x3d3   :  { %2269 = vsyncpa [#allocation4], 1 }
 0x3d4   :  { %2271 = vsyncpa [#allocation4 + $0x1], 1 }

</bundles_post_ra>
